<compile_context>
chip_gen: v7x
topology: tpu7x:2x2x1
jax: 0.10.0
libtpu: 0.0.40
codegen_flags: <defaults>
</compile_context>

<pallas_src>
import functools

import jax
import jax.numpy as jnp
import numpy as np
from jax.experimental import pallas as pl
from jax.experimental.pallas import tpu as pltpu


# --------------------------------------------------------------------------
# Host-side helpers (plain JAX glue)
# --------------------------------------------------------------------------
def bilinear_matrix(n_in, n_out):
    """1-D bilinear interpolation matrix (n_out, n_in), align_corners=True."""
    src = jnp.arange(n_out, dtype=jnp.float32) * (n_in - 1) / (n_out - 1)
    i0 = jnp.clip(jnp.floor(src).astype(jnp.int32), 0, n_in - 1)
    i1 = jnp.clip(i0 + 1, 0, n_in - 1)
    w1 = src - i0.astype(jnp.float32)
    w0 = 1.0 - w1
    rows = jnp.arange(n_out)
    A = jnp.zeros((n_out, n_in), jnp.float32)
    A = A.at[rows, i0].add(w0)
    A = A.at[rows, i1].add(w1)
    return A


def fold_bn(conv_bias, gamma, beta, mean, var, eps=1e-5):
    """Fold conv bias + eval-mode BatchNorm into a per-channel (scale, bias)."""
    scale = gamma / jnp.sqrt(var + eps)
    bias = beta + scale * (conv_bias - mean)
    return scale, bias


# --------------------------------------------------------------------------
# Pallas kernel 1: bilinear 2x upsample as ONE lane-dense matmul
# --------------------------------------------------------------------------
def _upsample_kernel(x_ref, mt_ref, o_ref):
    # x_ref: (RB, H*W); mt_ref: (H*W, Ho*Wo); o_ref: (RB, Ho*Wo)
    o_ref[...] = jnp.dot(x_ref[...], mt_ref[...],
                         preferred_element_type=jnp.float32).astype(o_ref.dtype)


def bilinear_upsample_2x_flat(x):
    """(N, C, H, W) -> (N, C, (2H)*(2W)) bilinear, align_corners=True."""
    N, C, H, W = x.shape
    Ho, Wo = 2 * H, 2 * W
    ah = bilinear_matrix(H, Ho)                       # (Ho, H)
    aw = bilinear_matrix(W, Wo)                       # (Wo, W)
    mt = jnp.kron(ah, aw).T                           # (H*W, Ho*Wo)

    rows = N * C
    rb = rows if rows <= 512 else 256                 # lane-dense row blocks
    rows_p = pl.cdiv(rows, rb) * rb
    xf = x.reshape(rows, H * W)
    if rows_p != rows:
        xf = jnp.pad(xf, ((0, rows_p - rows), (0, 0)))

    out = pl.pallas_call(
        _upsample_kernel,
        out_shape=jax.ShapeDtypeStruct((rows_p, Ho * Wo), x.dtype),
        grid=(rows_p // rb,),
        in_specs=[
            pl.BlockSpec((rb, H * W), lambda i: (i, 0)),
            pl.BlockSpec((H * W, Ho * Wo), lambda i: (0, 0)),
        ],
        out_specs=pl.BlockSpec((rb, Ho * Wo), lambda i: (i, 0)),
        compiler_params=pltpu.CompilerParams(dimension_semantics=("parallel",)),
    )(xf, mt)
    return out[:rows].reshape(N, C, Ho * Wo)


# --------------------------------------------------------------------------
# Pallas kernel 2: fused ConvX2 = (3x3 conv + folded BN + ReLU) x 2,
# NCHW-flattened, split-Cin first conv (fuses the channel concat away),
# taps via pltpu.roll on the lane axis.
# --------------------------------------------------------------------------
def _convx2_kernel(up_ref, res_ref, w1u_ref, w1r_ref, s1_ref, b1_ref,
                   w2_ref, s2_ref, b2_ref, o_ref, *, H1, W1):
    S1 = H1 * W1
    up = up_ref[0]                                    # (Cx, S1)
    res = res_ref[0]                                  # (Cr, S1)

    def shifted(v, off):
        # v[:, r] -> v[:, (r + off) mod S1]; wraparound only touches the
        # garbage border that is cropped at the end.
        return v if off == 0 else pltpu.roll(v, S1 - off, 1)

    # ---- conv1 (Cin split into residual + upsampled parts) + BN1 + ReLU ----
    c1 = w1u_ref.shape[1]
    acc1 = jnp.zeros((c1, S1), jnp.float32)
    for kh in range(3):
        for kw in range(3):
            off = kh * W1 + kw
            k = kh * 3 + kw
            acc1 = acc1 + jnp.dot(w1r_ref[k], shifted(res, off),
                                  preferred_element_type=jnp.float32)
            acc1 = acc1 + jnp.dot(w1u_ref[k], shifted(up, off),
                                  preferred_element_type=jnp.float32)
    y1 = jnp.maximum(acc1 * s1_ref[...] + b1_ref[...], 0.0)     # (C1, S1)

    # ---- conv2 + BN2 + ReLU (consumes y1 directly from VMEM) ----
    c2 = w2_ref.shape[1]
    acc2 = jnp.zeros((c2, S1), jnp.float32)
    for kh in range(3):
        for kw in range(3):
            off = kh * W1 + kw
            acc2 = acc2 + jnp.dot(w2_ref[kh * 3 + kw], shifted(y1, off),
                                  preferred_element_type=jnp.float32)
    y2 = jnp.maximum(acc2 * s2_ref[...] + b2_ref[...], 0.0)
    o_ref[0] = y2.astype(o_ref.dtype)


def convx2_fused(up_flat, res_flat, params, H1, W1):
    """Fused ConvX2 on NCHW-flattened inputs.

    up_flat:  (N, Cx, H1*W1)  upsampled tensor
    res_flat: (N, Cr, H1*W1)  center-cropped residual
    returns   (N, C2, H1*W1)  full-width result; valid region is
                              [:, :, :H1-4, :W1-4] after unflattening.
    """
    N, Cx, S1 = up_flat.shape
    Cr = res_flat.shape[1]
    w1, w2 = params["w1"], params["w2"]               # (9,C1,Cr+Cx), (9,C2,C1)
    C1, C2 = w1.shape[1], w2.shape[1]
    assert S1 == H1 * W1 and w1.shape[2] == Cr + Cx
    w1r = w1[:, :, :Cr]                               # residual channels first
    w1u = w1[:, :, Cr:]                               # then upsampled channels
    s1 = params["scale1"].reshape(C1, 1)
    b1 = params["bias1"].reshape(C1, 1)
    s2 = params["scale2"].reshape(C2, 1)
    b2 = params["bias2"].reshape(C2, 1)

    kernel = functools.partial(_convx2_kernel, H1=H1, W1=W1)
    return pl.pallas_call(
        kernel,
        out_shape=jax.ShapeDtypeStruct((N, C2, S1), up_flat.dtype),
        grid=(N,),
        in_specs=[
            pl.BlockSpec((1, Cx, S1), lambda n: (n, 0, 0)),
            pl.BlockSpec((1, Cr, S1), lambda n: (n, 0, 0)),
            pl.BlockSpec((9, C1, Cx), lambda n: (0, 0, 0)),
            pl.BlockSpec((9, C1, Cr), lambda n: (0, 0, 0)),
            pl.BlockSpec((C1, 1), lambda n: (0, 0)),
            pl.BlockSpec((C1, 1), lambda n: (0, 0)),
            pl.BlockSpec((9, C2, C1), lambda n: (0, 0, 0)),
            pl.BlockSpec((C2, 1), lambda n: (0, 0)),
            pl.BlockSpec((C2, 1), lambda n: (0, 0)),
        ],
        out_specs=pl.BlockSpec((1, C2, S1), lambda n: (n, 0, 0)),
        compiler_params=pltpu.CompilerParams(dimension_semantics=("parallel",)),
    )(up_flat, res_flat, w1u, w1r, s1, b1, w2, s2, b2)


# --------------------------------------------------------------------------
# UpSample.forward (NCHW in, NCHW out — no transposes anywhere)
# --------------------------------------------------------------------------
def upsample_forward(params, x, residual):
    N, Cx, H, W = x.shape
    H1, W1 = 2 * H, 2 * W
    # nn.Upsample(scale_factor=2, mode='bilinear', align_corners=True)
    up_flat = bilinear_upsample_2x_flat(x)                       # (N, Cx, H1*W1)
    # F.pad(residual, [-dx, -dx, -dy, -dy]) == symmetric center crop
    Hr, Wr = residual.shape[2], residual.shape[3]
    dy, dx = (Hr - H1) // 2, (Wr - W1) // 2
    res_c = residual[:, :, dy:Hr - dy, dx:Wr - dx]               # (N, Cr, H1, W1)
    res_flat = res_c.reshape(res_c.shape[0], res_c.shape[1], H1 * W1)
    # cat([x2, x1], dim=1) + ConvX2, fused (concat realized by split weights)
    y = convx2_fused(up_flat, res_flat, params, H1, W1)          # (N, C2, H1*W1)
    C2 = y.shape[1]
    return y.reshape(N, C2, H1, W1)[:, :, :H1 - 4, :W1 - 4]


# --------------------------------------------------------------------------
# Deterministic parameter init (shapes from ConvX2.__init__), weights stored
# as (9, Cout, Cin) i.e. per-tap (Cout, Cin) matrices for the NCHW-flat conv.
# --------------------------------------------------------------------------
def init_upsample_params(key, channels):
    c0, c1, c2 = channels
    ks = jax.random.split(key, 12)

    def he(k, cin, cout):  # kaiming_normal_: std = sqrt(2 / fan_in), fan_in = cin*9
        std = (2.0 / (cin * 9)) ** 0.5
        return jax.random.normal(k, (9, cout, cin), jnp.float32) * std

    w1 = he(ks[0], c0, c1)
    cb1 = 0.05 * jax.random.normal(ks[1], (c1,), jnp.float32)
    g1 = 1.0 + 0.1 * jax.random.normal(ks[2], (c1,), jnp.float32)
    be1 = 0.1 * jax.random.normal(ks[3], (c1,), jnp.float32)
    m1 = 0.1 * jax.random.normal(ks[4], (c1,), jnp.float32)
    v1 = jax.random.uniform(ks[5], (c1,), jnp.float32, 0.5, 1.5)
    scale1, bias1 = fold_bn(cb1, g1, be1, m1, v1)

    w2 = he(ks[6], c1, c2)
    cb2 = 0.05 * jax.random.normal(ks[7], (c2,), jnp.float32)
    g2 = 1.0 + 0.1 * jax.random.normal(ks[8], (c2,), jnp.float32)
    be2 = 0.1 * jax.random.normal(ks[9], (c2,), jnp.float32)
    m2 = 0.1 * jax.random.normal(ks[10], (c2,), jnp.float32)
    v2 = jax.random.uniform(ks[11], (c2,), jnp.float32, 0.5, 1.5)
    scale2, bias2 = fold_bn(cb2, g2, be2, m2, v2)

    return {"w1": w1, "scale1": scale1, "bias1": bias1,
            "w2": w2, "scale2": scale2, "bias2": bias2}


# --------------------------------------------------------------------------
# Pure-JAX reference for the correctness check
# --------------------------------------------------------------------------
def ref_forward(params, x, residual):
    N, Cx, H, W = x.shape
    ah = bilinear_matrix(H, 2 * H)
    aw = bilinear_matrix(W, 2 * W)
    x1 = jnp.einsum("oh,nchw,pw->ncop", ah, x, aw)
    Hr, Wr = residual.shape[2], residual.shape[3]
    Hu, Wu = x1.shape[2], x1.shape[3]
    dy = (Hr - Hu) // 2
    dx = (Wr - Wu) // 2
    x2 = residual[:, :, dy:Hr - dy, dx:Wr - dx]
    h = jnp.concatenate([x2, x1], axis=1)

    def block(h, w, scale, bias):
        cout, cin = w.shape[1], w.shape[2]
        w4 = jnp.transpose(w, (0, 2, 1)).reshape(3, 3, cin, cout)   # HWIO
        out = jax.lax.conv_general_dilated(
            h, w4, window_strides=(1, 1), padding="VALID",
            dimension_numbers=("NCHW", "HWIO", "NCHW"))
        out = out * scale[None, :, None, None] + bias[None, :, None, None]
        return jnp.maximum(out, 0.0)

    h = block(h, params["w1"], params["scale1"], params["bias1"])
    h = block(h, params["w2"], params["scale2"], params["bias2"])
    return h


if __name__ == "__main__":
    key = jax.random.PRNGKey(0)
    kx, kr, kp = jax.random.split(key, 3)

    N, Cx, H, W = 2, 2, 8, 8          # x -> upsampled to 16x16
    Cr, Hr, Wr = 2, 20, 20            # residual larger -> center crop 2/side
    channels = (Cx + Cr, 8, 8)        # channels[0] must equal concat channels

    x = jax.random.normal(kx, (N, Cx, H, W), jnp.float32)
    residual = jax.random.normal(kr, (N, Cr, Hr, Wr), jnp.float32)
    params = init_upsample_params(kp, channels)

    out = jax.jit(upsample_forward)(params, x, residual)
    out = jax.block_until_ready(out)
    assert out.shape == (N, channels[2], 2 * H - 4, 2 * W - 4), out.shape

    ref = jax.block_until_ready(ref_forward(params, x, residual))
    np.testing.assert_allclose(np.asarray(out), np.asarray(ref),
                               rtol=2e-2, atol=2e-2)

    print("KERNEL_OK")
</pallas_src>

<mosaic_0001>
module attributes {stable_mosaic.version = 11 : i64} {
  func.func private @main(%arg0: i32) attributes {dimension_semantics = [#tpu.dimension_semantics<core_parallel>], iteration_bounds = array<i64: 2>, tpu.core_type = #tpu.core_type<sc_scalar_subcore>, window_params = []} {
    return
  }
}

module attributes {stable_mosaic.version = 11 : i64} {
  func.func private @main(%arg0: i32) attributes {dimension_semantics = [#tpu.dimension_semantics<core_parallel>], iteration_bounds = array<i64: 2>, tpu.core_type = #tpu.core_type<sc_scalar_subcore>, window_params = []} {
    return
  }
}

module attributes {stable_mosaic.version = 11 : i64} {
  func.func @_upsample_kernel(%arg0: i32, %arg1: memref<4x64xf32, #tpu.memory_space<vmem>>, %arg2: memref<64x256xf32, #tpu.memory_space<vmem>>, %arg3: memref<4x256xf32, #tpu.memory_space<vmem>>) attributes {dimension_semantics = [#tpu.dimension_semantics<parallel>], iteration_bounds = array<i64: 1>, scalar_prefetch = 0 : i64, scratch_operands = 0 : i64, tpu.core_type = #tpu.core_type<tc>, window_params = [{transform_indices = @transform_0, window_bounds = array<i64: 4, 64>}, {pipeline_mode = #tpu.pipeline_mode<synchronous>, transform_indices = @transform_1, window_bounds = array<i64: 64, 256>}, {transform_indices = @transform_2, window_bounds = array<i64: 4, 256>}]} {
    %c0 = arith.constant 0 : index
    %c0_0 = arith.constant 0 : index
    %0 = vector.load %arg1[%c0, %c0_0] : memref<4x64xf32, #tpu.memory_space<vmem>>, vector<4x64xf32>
    %c0_1 = arith.constant 0 : index
    %c0_2 = arith.constant 0 : index
    %1 = vector.load %arg2[%c0_1, %c0_2] : memref<64x256xf32, #tpu.memory_space<vmem>>, vector<64x256xf32>
    %cst = arith.constant dense<0.000000e+00> : vector<4x256xf32>
    %2 = tpu.matmul %0, %1, %cst {dimension_numbers = #tpu.dot_dimension_numbers<[1], [0], [0], [1], [0, 0, 1, 1], [], []>} : vector<4x64xf32>, vector<64x256xf32>, vector<4x256xf32> -> vector<4x256xf32>
    %c0_3 = arith.constant 0 : index
    %c0_4 = arith.constant 0 : index
    %3 = vector.load %arg3[%c0_3, %c0_4] : memref<4x256xf32, #tpu.memory_space<vmem>>, vector<4x256xf32>
    tpu.vector_store %arg3[%c0_3, %c0_4], %2 {strides = array<i32>} : memref<4x256xf32, #tpu.memory_space<vmem>>, vector<4x256xf32>,
    return
  }
  func.func @transform_0(%arg0: i32) -> (i32, i32) {
    %c0_i32 = arith.constant 0 : i32
    %c0_i32_0 = arith.constant 0 : i32
    return %arg0, %c0_i32 : i32, i32
  }
  func.func @transform_1(%arg0: i32) -> (i32, i32) {
    %c0_i32 = arith.constant 0 : i32
    %c0_i32_0 = arith.constant 0 : i32
    %c0_i32_1 = arith.constant 0 : i32
    return %c0_i32, %c0_i32_0 : i32, i32
  }
  func.func @transform_2(%arg0: i32) -> (i32, i32) {
    %c0_i32 = arith.constant 0 : i32
    %c0_i32_0 = arith.constant 0 : i32
    return %arg0, %c0_i32 : i32, i32
  }
}

module attributes {stable_mosaic.version = 11 : i64} {
  func.func @_convx2_kernel(%arg0: i32, %arg1: memref<1x2x256xf32, #tpu.memory_space<vmem>>, %arg2: memref<1x2x256xf32, #tpu.memory_space<vmem>>, %arg3: memref<9x8x2xf32, #tpu.memory_space<vmem>>, %arg4: memref<9x8x2xf32, #tpu.memory_space<vmem>>, %arg5: memref<8x1xf32, #tpu.memory_space<vmem>>, %arg6: memref<8x1xf32, #tpu.memory_space<vmem>>, %arg7: memref<9x8x8xf32, #tpu.memory_space<vmem>>, %arg8: memref<8x1xf32, #tpu.memory_space<vmem>>, %arg9: memref<8x1xf32, #tpu.memory_space<vmem>>, %arg10: memref<1x8x256xf32, #tpu.memory_space<vmem>>) attributes {dimension_semantics = [#tpu.dimension_semantics<parallel>], iteration_bounds = array<i64: 2>, scalar_prefetch = 0 : i64, scratch_operands = 0 : i64, tpu.core_type = #tpu.core_type<tc>, window_params = [{transform_indices = @transform_0, window_bounds = array<i64: 1, 2, 256>}, {transform_indices = @transform_1, window_bounds = array<i64: 1, 2, 256>}, {pipeline_mode = #tpu.pipeline_mode<synchronous>, transform_indices = @transform_2, window_bounds = array<i64: 9, 8, 2>}, {pipeline_mode = #tpu.pipeline_mode<synchronous>, transform_indices = @transform_3, window_bounds = array<i64: 9, 8, 2>}, {pipeline_mode = #tpu.pipeline_mode<synchronous>, transform_indices = @transform_4, window_bounds = array<i64: 8, 1>}, {pipeline_mode = #tpu.pipeline_mode<synchronous>, transform_indices = @transform_5, window_bounds = array<i64: 8, 1>}, {pipeline_mode = #tpu.pipeline_mode<synchronous>, transform_indices = @transform_6, window_bounds = array<i64: 9, 8, 8>}, {pipeline_mode = #tpu.pipeline_mode<synchronous>, transform_indices = @transform_7, window_bounds = array<i64: 8, 1>}, {pipeline_mode = #tpu.pipeline_mode<synchronous>, transform_indices = @transform_8, window_bounds = array<i64: 8, 1>}, {transform_indices = @transform_9, window_bounds = array<i64: 1, 8, 256>}]} {
    %c0 = arith.constant 0 : index
    %c0_0 = arith.constant 0 : index
    %c0_1 = arith.constant 0 : index
    %0 = vector.load %arg1[%c0, %c0_0, %c0_1] : memref<1x2x256xf32, #tpu.memory_space<vmem>>, vector<1x2x256xf32>
    %1 = vector.shape_cast %0 : vector<1x2x256xf32> to vector<2x256xf32>
    %c0_2 = arith.constant 0 : index
    %c0_3 = arith.constant 0 : index
    %c0_4 = arith.constant 0 : index
    %2 = vector.load %arg2[%c0_2, %c0_3, %c0_4] : memref<1x2x256xf32, #tpu.memory_space<vmem>>, vector<1x2x256xf32>
    %3 = vector.shape_cast %2 : vector<1x2x256xf32> to vector<2x256xf32>
    %cst = arith.constant 0.000000e+00 : f32
    %4 = vector.broadcast %cst : f32 to vector<8x256xf32>
    %c0_5 = arith.constant 0 : index
    %c0_6 = arith.constant 0 : index
    %c0_7 = arith.constant 0 : index
    %5 = vector.load %arg4[%c0_5, %c0_6, %c0_7] : memref<9x8x2xf32, #tpu.memory_space<vmem>>, vector<1x8x2xf32>
    %6 = vector.shape_cast %5 : vector<1x8x2xf32> to vector<8x2xf32>
    %cst_8 = arith.constant dense<0.000000e+00> : vector<8x256xf32>
    %7 = tpu.matmul %6, %3, %cst_8 {dimension_numbers = #tpu.dot_dimension_numbers<[1], [0], [0], [1], [0, 0, 1, 1], [], []>} : vector<8x2xf32>, vector<2x256xf32>, vector<8x256xf32> -> vector<8x256xf32>
    %8 = arith.addf %4, %7 : vector<8x256xf32>
    %c0_9 = arith.constant 0 : index
    %c0_10 = arith.constant 0 : index
    %c0_11 = arith.constant 0 : index
    %9 = vector.load %arg3[%c0_9, %c0_10, %c0_11] : memref<9x8x2xf32, #tpu.memory_space<vmem>>, vector<1x8x2xf32>
    %10 = vector.shape_cast %9 : vector<1x8x2xf32> to vector<8x2xf32>
    %cst_12 = arith.constant dense<0.000000e+00> : vector<8x256xf32>
    %11 = tpu.matmul %10, %1, %cst_12 {dimension_numbers = #tpu.dot_dimension_numbers<[1], [0], [0], [1], [0, 0, 1, 1], [], []>} : vector<8x2xf32>, vector<2x256xf32>, vector<8x256xf32> -> vector<8x256xf32>
    %12 = arith.addf %8, %11 : vector<8x256xf32>
    %c1 = arith.constant 1 : index
    %c0_13 = arith.constant 0 : index
    %c0_14 = arith.constant 0 : index
    %13 = vector.load %arg4[%c1, %c0_13, %c0_14] : memref<9x8x2xf32, #tpu.memory_space<vmem>>, vector<1x8x2xf32>
    %14 = vector.shape_cast %13 : vector<1x8x2xf32> to vector<8x2xf32>
    %c255_i32 = arith.constant 255 : i32
    %15 = tpu.dynamic_rotate %3 by %c255_i32 dim 1 : vector<2x256xf32>, i32 -> vector<2x256xf32>
    %cst_15 = arith.constant dense<0.000000e+00> : vector<8x256xf32>
    %16 = tpu.matmul %14, %15, %cst_15 {dimension_numbers = #tpu.dot_dimension_numbers<[1], [0], [0], [1], [0, 0, 1, 1], [], []>} : vector<8x2xf32>, vector<2x256xf32>, vector<8x256xf32> -> vector<8x256xf32>
    %17 = arith.addf %12, %16 : vector<8x256xf32>
    %c1_16 = arith.constant 1 : index
    %c0_17 = arith.constant 0 : index
    %c0_18 = arith.constant 0 : index
    %18 = vector.load %arg3[%c1_16, %c0_17, %c0_18] : memref<9x8x2xf32, #tpu.memory_space<vmem>>, vector<1x8x2xf32>
    %19 = vector.shape_cast %18 : vector<1x8x2xf32> to vector<8x2xf32>
    %c255_i32_19 = arith.constant 255 : i32
    %20 = tpu.dynamic_rotate %1 by %c255_i32_19 dim 1 : vector<2x256xf32>, i32 -> vector<2x256xf32>
    %cst_20 = arith.constant dense<0.000000e+00> : vector<8x256xf32>
    %21 = tpu.matmul %19, %20, %cst_20 {dimension_numbers = #tpu.dot_dimension_numbers<[1], [0], [0], [1], [0, 0, 1, 1], [], []>} : vector<8x2xf32>, vector<2x256xf32>, vector<8x256xf32> -> vector<8x256xf32>
    %22 = arith.addf %17, %21 : vector<8x256xf32>
    %c2 = arith.constant 2 : index
    %c0_21 = arith.constant 0 : index
    %c0_22 = arith.constant 0 : index
    %23 = vector.load %arg4[%c2, %c0_21, %c0_22] : memref<9x8x2xf32, #tpu.memory_space<vmem>>, vector<1x8x2xf32>
    %24 = vector.shape_cast %23 : vector<1x8x2xf32> to vector<8x2xf32>
    %c254_i32 = arith.constant 254 : i32
    %25 = tpu.dynamic_rotate %3 by %c254_i32 dim 1 : vector<2x256xf32>, i32 -> vector<2x256xf32>
    %cst_23 = arith.constant dense<0.000000e+00> : vector<8x256xf32>
    %26 = tpu.matmul %24, %25, %cst_23 {dimension_numbers = #tpu.dot_dimension_numbers<[1], [0], [0], [1], [0, 0, 1, 1], [], []>} : vector<8x2xf32>, vector<2x256xf32>, vector<8x256xf32> -> vector<8x256xf32>
    %27 = arith.addf %22, %26 : vector<8x256xf32>
    %c2_24 = arith.constant 2 : index
    %c0_25 = arith.constant 0 : index
    %c0_26 = arith.constant 0 : index
    %28 = vector.load %arg3[%c2_24, %c0_25, %c0_26] : memref<9x8x2xf32, #tpu.memory_space<vmem>>, vector<1x8x2xf32>
    %29 = vector.shape_cast %28 : vector<1x8x2xf32> to vector<8x2xf32>
    %c254_i32_27 = arith.constant 254 : i32
    %30 = tpu.dynamic_rotate %1 by %c254_i32_27 dim 1 : vector<2x256xf32>, i32 -> vector<2x256xf32>
    %cst_28 = arith.constant dense<0.000000e+00> : vector<8x256xf32>
    %31 = tpu.matmul %29, %30, %cst_28 {dimension_numbers = #tpu.dot_dimension_numbers<[1], [0], [0], [1], [0, 0, 1, 1], [], []>} : vector<8x2xf32>, vector<2x256xf32>, vector<8x256xf32> -> vector<8x256xf32>
    %32 = arith.addf %27, %31 : vector<8x256xf32>
    %c3 = arith.constant 3 : index
    %c0_29 = arith.constant 0 : index
    %c0_30 = arith.constant 0 : index
    %33 = vector.load %arg4[%c3, %c0_29, %c0_30] : memref<9x8x2xf32, #tpu.memory_space<vmem>>, vector<1x8x2xf32>
    %34 = vector.shape_cast %33 : vector<1x8x2xf32> to vector<8x2xf32>
    %c240_i32 = arith.constant 240 : i32
    %35 = tpu.dynamic_rotate %3 by %c240_i32 dim 1 : vector<2x256xf32>, i32 -> vector<2x256xf32>
    %cst_31 = arith.constant dense<0.000000e+00> : vector<8x256xf32>
    %36 = tpu.matmul %34, %35, %cst_31 {dimension_numbers = #tpu.dot_dimension_numbers<[1], [0], [0], [1], [0, 0, 1, 1], [], []>} : vector<8x2xf32>, vector<2x256xf32>, vector<8x256xf32> -> vector<8x256xf32>
    %37 = arith.addf %32, %36 : vector<8x256xf32>
    %c3_32 = arith.constant 3 : index
    %c0_33 = arith.constant 0 : index
    %c0_34 = arith.constant 0 : index
    %38 = vector.load %arg3[%c3_32, %c0_33, %c0_34] : memref<9x8x2xf32, #tpu.memory_space<vmem>>, vector<1x8x2xf32>
    %39 = vector.shape_cast %38 : vector<1x8x2xf32> to vector<8x2xf32>
    %c240_i32_35 = arith.constant 240 : i32
    %40 = tpu.dynamic_rotate %1 by %c240_i32_35 dim 1 : vector<2x256xf32>, i32 -> vector<2x256xf32>
    %cst_36 = arith.constant dense<0.000000e+00> : vector<8x256xf32>
    %41 = tpu.matmul %39, %40, %cst_36 {dimension_numbers = #tpu.dot_dimension_numbers<[1], [0], [0], [1], [0, 0, 1, 1], [], []>} : vector<8x2xf32>, vector<2x256xf32>, vector<8x256xf32> -> vector<8x256xf32>
    %42 = arith.addf %37, %41 : vector<8x256xf32>
    %c4 = arith.constant 4 : index
    %c0_37 = arith.constant 0 : index
    %c0_38 = arith.constant 0 : index
    %43 = vector.load %arg4[%c4, %c0_37, %c0_38] : memref<9x8x2xf32, #tpu.memory_space<vmem>>, vector<1x8x2xf32>
    %44 = vector.shape_cast %43 : vector<1x8x2xf32> to vector<8x2xf32>
    %c239_i32 = arith.constant 239 : i32
    %45 = tpu.dynamic_rotate %3 by %c239_i32 dim 1 : vector<2x256xf32>, i32 -> vector<2x256xf32>
    %cst_39 = arith.constant dense<0.000000e+00> : vector<8x256xf32>
    %46 = tpu.matmul %44, %45, %cst_39 {dimension_numbers = #tpu.dot_dimension_numbers<[1], [0], [0], [1], [0, 0, 1, 1], [], []>} : vector<8x2xf32>, vector<2x256xf32>, vector<8x256xf32> -> vector<8x256xf32>
    %47 = arith.addf %42, %46 : vector<8x256xf32>
    %c4_40 = arith.constant 4 : index
    %c0_41 = arith.constant 0 : index
    %c0_42 = arith.constant 0 : index
    %48 = vector.load %arg3[%c4_40, %c0_41, %c0_42] : memref<9x8x2xf32, #tpu.memory_space<vmem>>, vector<1x8x2xf32>
    %49 = vector.shape_cast %48 : vector<1x8x2xf32> to vector<8x2xf32>
    %c239_i32_43 = arith.constant 239 : i32
    %50 = tpu.dynamic_rotate %1 by %c239_i32_43 dim 1 : vector<2x256xf32>, i32 -> vector<2x256xf32>
    %cst_44 = arith.constant dense<0.000000e+00> : vector<8x256xf32>
    %51 = tpu.matmul %49, %50, %cst_44 {dimension_numbers = #tpu.dot_dimension_numbers<[1], [0], [0], [1], [0, 0, 1, 1], [], []>} : vector<8x2xf32>, vector<2x256xf32>, vector<8x256xf32> -> vector<8x256xf32>
    %52 = arith.addf %47, %51 : vector<8x256xf32>
    %c5 = arith.constant 5 : index
    %c0_45 = arith.constant 0 : index
    %c0_46 = arith.constant 0 : index
    %53 = vector.load %arg4[%c5, %c0_45, %c0_46] : memref<9x8x2xf32, #tpu.memory_space<vmem>>, vector<1x8x2xf32>
    %54 = vector.shape_cast %53 : vector<1x8x2xf32> to vector<8x2xf32>
    %c238_i32 = arith.constant 238 : i32
    %55 = tpu.dynamic_rotate %3 by %c238_i32 dim 1 : vector<2x256xf32>, i32 -> vector<2x256xf32>
    %cst_47 = arith.constant dense<0.000000e+00> : vector<8x256xf32>
    %56 = tpu.matmul %54, %55, %cst_47 {dimension_numbers = #tpu.dot_dimension_numbers<[1], [0], [0], [1], [0, 0, 1, 1], [], []>} : vector<8x2xf32>, vector<2x256xf32>, vector<8x256xf32> -> vector<8x256xf32>
    %57 = arith.addf %52, %56 : vector<8x256xf32>
    %c5_48 = arith.constant 5 : index
    %c0_49 = arith.constant 0 : index
    %c0_50 = arith.constant 0 : index
    %58 = vector.load %arg3[%c5_48, %c0_49, %c0_50] : memref<9x8x2xf32, #tpu.memory_space<vmem>>, vector<1x8x2xf32>
    %59 = vector.shape_cast %58 : vector<1x8x2xf32> to vector<8x2xf32>
    %c238_i32_51 = arith.constant 238 : i32
    %60 = tpu.dynamic_rotate %1 by %c238_i32_51 dim 1 : vector<2x256xf32>, i32 -> vector<2x256xf32>
    %cst_52 = arith.constant dense<0.000000e+00> : vector<8x256xf32>
    %61 = tpu.matmul %59, %60, %cst_52 {dimension_numbers = #tpu.dot_dimension_numbers<[1], [0], [0], [1], [0, 0, 1, 1], [], []>} : vector<8x2xf32>, vector<2x256xf32>, vector<8x256xf32> -> vector<8x256xf32>
    %62 = arith.addf %57, %61 : vector<8x256xf32>
    %c6 = arith.constant 6 : index
    %c0_53 = arith.constant 0 : index
    %c0_54 = arith.constant 0 : index
    %63 = vector.load %arg4[%c6, %c0_53, %c0_54] : memref<9x8x2xf32, #tpu.memory_space<vmem>>, vector<1x8x2xf32>
    %64 = vector.shape_cast %63 : vector<1x8x2xf32> to vector<8x2xf32>
    %c224_i32 = arith.constant 224 : i32
    %65 = tpu.dynamic_rotate %3 by %c224_i32 dim 1 : vector<2x256xf32>, i32 -> vector<2x256xf32>
    %cst_55 = arith.constant dense<0.000000e+00> : vector<8x256xf32>
    %66 = tpu.matmul %64, %65, %cst_55 {dimension_numbers = #tpu.dot_dimension_numbers<[1], [0], [0], [1], [0, 0, 1, 1], [], []>} : vector<8x2xf32>, vector<2x256xf32>, vector<8x256xf32> -> vector<8x256xf32>
    %67 = arith.addf %62, %66 : vector<8x256xf32>
    %c6_56 = arith.constant 6 : index
    %c0_57 = arith.constant 0 : index
    %c0_58 = arith.constant 0 : index
    %68 = vector.load %arg3[%c6_56, %c0_57, %c0_58] : memref<9x8x2xf32, #tpu.memory_space<vmem>>, vector<1x8x2xf32>
    %69 = vector.shape_cast %68 : vector<1x8x2xf32> to vector<8x2xf32>
    %c224_i32_59 = arith.constant 224 : i32
    %70 = tpu.dynamic_rotate %1 by %c224_i32_59 dim 1 : vector<2x256xf32>, i32 -> vector<2x256xf32>
    %cst_60 = arith.constant dense<0.000000e+00> : vector<8x256xf32>
    %71 = tpu.matmul %69, %70, %cst_60 {dimension_numbers = #tpu.dot_dimension_numbers<[1], [0], [0], [1], [0, 0, 1, 1], [], []>} : vector<8x2xf32>, vector<2x256xf32>, vector<8x256xf32> -> vector<8x256xf32>
    %72 = arith.addf %67, %71 : vector<8x256xf32>
    %c7 = arith.constant 7 : index
    %c0_61 = arith.constant 0 : index
    %c0_62 = arith.constant 0 : index
    %73 = vector.load %arg4[%c7, %c0_61, %c0_62] : memref<9x8x2xf32, #tpu.memory_space<vmem>>, vector<1x8x2xf32>
    %74 = vector.shape_cast %73 : vector<1x8x2xf32> to vector<8x2xf32>
    %c223_i32 = arith.constant 223 : i32
    %75 = tpu.dynamic_rotate %3 by %c223_i32 dim 1 : vector<2x256xf32>, i32 -> vector<2x256xf32>
    %cst_63 = arith.constant dense<0.000000e+00> : vector<8x256xf32>
    %76 = tpu.matmul %74, %75, %cst_63 {dimension_numbers = #tpu.dot_dimension_numbers<[1], [0], [0], [1], [0, 0, 1, 1], [], []>} : vector<8x2xf32>, vector<2x256xf32>, vector<8x256xf32> -> vector<8x256xf32>
    %77 = arith.addf %72, %76 : vector<8x256xf32>
    %c7_64 = arith.constant 7 : index
    %c0_65 = arith.constant 0 : index
    %c0_66 = arith.constant 0 : index
    %78 = vector.load %arg3[%c7_64, %c0_65, %c0_66] : memref<9x8x2xf32, #tpu.memory_space<vmem>>, vector<1x8x2xf32>
    %79 = vector.shape_cast %78 : vector<1x8x2xf32> to vector<8x2xf32>
    %c223_i32_67 = arith.constant 223 : i32
    %80 = tpu.dynamic_rotate %1 by %c223_i32_67 dim 1 : vector<2x256xf32>, i32 -> vector<2x256xf32>
    %cst_68 = arith.constant dense<0.000000e+00> : vector<8x256xf32>
    %81 = tpu.matmul %79, %80, %cst_68 {dimension_numbers = #tpu.dot_dimension_numbers<[1], [0], [0], [1], [0, 0, 1, 1], [], []>} : vector<8x2xf32>, vector<2x256xf32>, vector<8x256xf32> -> vector<8x256xf32>
    %82 = arith.addf %77, %81 : vector<8x256xf32>
    %c8 = arith.constant 8 : index
    %c0_69 = arith.constant 0 : index
    %c0_70 = arith.constant 0 : index
    %83 = vector.load %arg4[%c8, %c0_69, %c0_70] : memref<9x8x2xf32, #tpu.memory_space<vmem>>, vector<1x8x2xf32>
    %84 = vector.shape_cast %83 : vector<1x8x2xf32> to vector<8x2xf32>
    %c222_i32 = arith.constant 222 : i32
    %85 = tpu.dynamic_rotate %3 by %c222_i32 dim 1 : vector<2x256xf32>, i32 -> vector<2x256xf32>
    %cst_71 = arith.constant dense<0.000000e+00> : vector<8x256xf32>
    %86 = tpu.matmul %84, %85, %cst_71 {dimension_numbers = #tpu.dot_dimension_numbers<[1], [0], [0], [1], [0, 0, 1, 1], [], []>} : vector<8x2xf32>, vector<2x256xf32>, vector<8x256xf32> -> vector<8x256xf32>
    %87 = arith.addf %82, %86 : vector<8x256xf32>
    %c8_72 = arith.constant 8 : index
    %c0_73 = arith.constant 0 : index
    %c0_74 = arith.constant 0 : index
    %88 = vector.load %arg3[%c8_72, %c0_73, %c0_74] : memref<9x8x2xf32, #tpu.memory_space<vmem>>, vector<1x8x2xf32>
    %89 = vector.shape_cast %88 : vector<1x8x2xf32> to vector<8x2xf32>
    %c222_i32_75 = arith.constant 222 : i32
    %90 = tpu.dynamic_rotate %1 by %c222_i32_75 dim 1 : vector<2x256xf32>, i32 -> vector<2x256xf32>
    %cst_76 = arith.constant dense<0.000000e+00> : vector<8x256xf32>
    %91 = tpu.matmul %89, %90, %cst_76 {dimension_numbers = #tpu.dot_dimension_numbers<[1], [0], [0], [1], [0, 0, 1, 1], [], []>} : vector<8x2xf32>, vector<2x256xf32>, vector<8x256xf32> -> vector<8x256xf32>
    %92 = arith.addf %87, %91 : vector<8x256xf32>
    %c0_77 = arith.constant 0 : index
    %c0_78 = arith.constant 0 : index
    %93 = vector.load %arg5[%c0_77, %c0_78] : memref<8x1xf32, #tpu.memory_space<vmem>>, vector<8x1xf32>
    %94 = vector.broadcast %93 : vector<8x1xf32> to vector<8x256xf32>
    %95 = arith.mulf %92, %94 : vector<8x256xf32>
    %c0_79 = arith.constant 0 : index
    %c0_80 = arith.constant 0 : index
    %96 = vector.load %arg6[%c0_79, %c0_80] : memref<8x1xf32, #tpu.memory_space<vmem>>, vector<8x1xf32>
    %97 = vector.broadcast %96 : vector<8x1xf32> to vector<8x256xf32>
    %98 = arith.addf %95, %97 : vector<8x256xf32>
    %cst_81 = arith.constant 0.000000e+00 : f32
    %99 = vector.broadcast %cst_81 : f32 to vector<8x256xf32>
    %100 = arith.maximumf %98, %99 : vector<8x256xf32>
    %cst_82 = arith.constant 0.000000e+00 : f32
    %101 = vector.broadcast %cst_82 : f32 to vector<8x256xf32>
    %c0_83 = arith.constant 0 : index
    %c0_84 = arith.constant 0 : index
    %c0_85 = arith.constant 0 : index
    %102 = vector.load %arg7[%c0_83, %c0_84, %c0_85] : memref<9x8x8xf32, #tpu.memory_space<vmem>>, vector<1x8x8xf32>
    %103 = vector.shape_cast %102 : vector<1x8x8xf32> to vector<8x8xf32>
    %cst_86 = arith.constant dense<0.000000e+00> : vector<8x256xf32>
    %104 = tpu.matmul %103, %100, %cst_86 {dimension_numbers = #tpu.dot_dimension_numbers<[1], [0], [0], [1], [0, 0, 1, 1], [], []>} : vector<8x8xf32>, vector<8x256xf32>, vector<8x256xf32> -> vector<8x256xf32>
    %105 = arith.addf %101, %104 : vector<8x256xf32>
    %c1_87 = arith.constant 1 : index
    %c0_88 = arith.constant 0 : index
    %c0_89 = arith.constant 0 : index
    %106 = vector.load %arg7[%c1_87, %c0_88, %c0_89] : memref<9x8x8xf32, #tpu.memory_space<vmem>>, vector<1x8x8xf32>
    %107 = vector.shape_cast %106 : vector<1x8x8xf32> to vector<8x8xf32>
    %c255_i32_90 = arith.constant 255 : i32
    %108 = tpu.dynamic_rotate %100 by %c255_i32_90 dim 1 : vector<8x256xf32>, i32 -> vector<8x256xf32>
    %cst_91 = arith.constant dense<0.000000e+00> : vector<8x256xf32>
    %109 = tpu.matmul %107, %108, %cst_91 {dimension_numbers = #tpu.dot_dimension_numbers<[1], [0], [0], [1], [0, 0, 1, 1], [], []>} : vector<8x8xf32>, vector<8x256xf32>, vector<8x256xf32> -> vector<8x256xf32>
    %110 = arith.addf %105, %109 : vector<8x256xf32>
    %c2_92 = arith.constant 2 : index
    %c0_93 = arith.constant 0 : index
    %c0_94 = arith.constant 0 : index
    %111 = vector.load %arg7[%c2_92, %c0_93, %c0_94] : memref<9x8x8xf32, #tpu.memory_space<vmem>>, vector<1x8x8xf32>
    %112 = vector.shape_cast %111 : vector<1x8x8xf32> to vector<8x8xf32>
    %c254_i32_95 = arith.constant 254 : i32
    %113 = tpu.dynamic_rotate %100 by %c254_i32_95 dim 1 : vector<8x256xf32>, i32 -> vector<8x256xf32>
    %cst_96 = arith.constant dense<0.000000e+00> : vector<8x256xf32>
    %114 = tpu.matmul %112, %113, %cst_96 {dimension_numbers = #tpu.dot_dimension_numbers<[1], [0], [0], [1], [0, 0, 1, 1], [], []>} : vector<8x8xf32>, vector<8x256xf32>, vector<8x256xf32> -> vector<8x256xf32>
    %115 = arith.addf %110, %114 : vector<8x256xf32>
    %c3_97 = arith.constant 3 : index
    %c0_98 = arith.constant 0 : index
    %c0_99 = arith.constant 0 : index
    %116 = vector.load %arg7[%c3_97, %c0_98, %c0_99] : memref<9x8x8xf32, #tpu.memory_space<vmem>>, vector<1x8x8xf32>
    %117 = vector.shape_cast %116 : vector<1x8x8xf32> to vector<8x8xf32>
    %c240_i32_100 = arith.constant 240 : i32
    %118 = tpu.dynamic_rotate %100 by %c240_i32_100 dim 1 : vector<8x256xf32>, i32 -> vector<8x256xf32>
    %cst_101 = arith.constant dense<0.000000e+00> : vector<8x256xf32>
    %119 = tpu.matmul %117, %118, %cst_101 {dimension_numbers = #tpu.dot_dimension_numbers<[1], [0], [0], [1], [0, 0, 1, 1], [], []>} : vector<8x8xf32>, vector<8x256xf32>, vector<8x256xf32> -> vector<8x256xf32>
    %120 = arith.addf %115, %119 : vector<8x256xf32>
    %c4_102 = arith.constant 4 : index
    %c0_103 = arith.constant 0 : index
    %c0_104 = arith.constant 0 : index
    %121 = vector.load %arg7[%c4_102, %c0_103, %c0_104] : memref<9x8x8xf32, #tpu.memory_space<vmem>>, vector<1x8x8xf32>
    %122 = vector.shape_cast %121 : vector<1x8x8xf32> to vector<8x8xf32>
    %c239_i32_105 = arith.constant 239 : i32
    %123 = tpu.dynamic_rotate %100 by %c239_i32_105 dim 1 : vector<8x256xf32>, i32 -> vector<8x256xf32>
    %cst_106 = arith.constant dense<0.000000e+00> : vector<8x256xf32>
    %124 = tpu.matmul %122, %123, %cst_106 {dimension_numbers = #tpu.dot_dimension_numbers<[1], [0], [0], [1], [0, 0, 1, 1], [], []>} : vector<8x8xf32>, vector<8x256xf32>, vector<8x256xf32> -> vector<8x256xf32>
    %125 = arith.addf %120, %124 : vector<8x256xf32>
    %c5_107 = arith.constant 5 : index
    %c0_108 = arith.constant 0 : index
    %c0_109 = arith.constant 0 : index
    %126 = vector.load %arg7[%c5_107, %c0_108, %c0_109] : memref<9x8x8xf32, #tpu.memory_space<vmem>>, vector<1x8x8xf32>
    %127 = vector.shape_cast %126 : vector<1x8x8xf32> to vector<8x8xf32>
    %c238_i32_110 = arith.constant 238 : i32
    %128 = tpu.dynamic_rotate %100 by %c238_i32_110 dim 1 : vector<8x256xf32>, i32 -> vector<8x256xf32>
    %cst_111 = arith.constant dense<0.000000e+00> : vector<8x256xf32>
    %129 = tpu.matmul %127, %128, %cst_111 {dimension_numbers = #tpu.dot_dimension_numbers<[1], [0], [0], [1], [0, 0, 1, 1], [], []>} : vector<8x8xf32>, vector<8x256xf32>, vector<8x256xf32> -> vector<8x256xf32>
    %130 = arith.addf %125, %129 : vector<8x256xf32>
    %c6_112 = arith.constant 6 : index
    %c0_113 = arith.constant 0 : index
    %c0_114 = arith.constant 0 : index
    %131 = vector.load %arg7[%c6_112, %c0_113, %c0_114] : memref<9x8x8xf32, #tpu.memory_space<vmem>>, vector<1x8x8xf32>
    %132 = vector.shape_cast %131 : vector<1x8x8xf32> to vector<8x8xf32>
    %c224_i32_115 = arith.constant 224 : i32
    %133 = tpu.dynamic_rotate %100 by %c224_i32_115 dim 1 : vector<8x256xf32>, i32 -> vector<8x256xf32>
    %cst_116 = arith.constant dense<0.000000e+00> : vector<8x256xf32>
    %134 = tpu.matmul %132, %133, %cst_116 {dimension_numbers = #tpu.dot_dimension_numbers<[1], [0], [0], [1], [0, 0, 1, 1], [], []>} : vector<8x8xf32>, vector<8x256xf32>, vector<8x256xf32> -> vector<8x256xf32>
    %135 = arith.addf %130, %134 : vector<8x256xf32>
    %c7_117 = arith.constant 7 : index
    %c0_118 = arith.constant 0 : index
    %c0_119 = arith.constant 0 : index
    %136 = vector.load %arg7[%c7_117, %c0_118, %c0_119] : memref<9x8x8xf32, #tpu.memory_space<vmem>>, vector<1x8x8xf32>
    %137 = vector.shape_cast %136 : vector<1x8x8xf32> to vector<8x8xf32>
    %c223_i32_120 = arith.constant 223 : i32
    %138 = tpu.dynamic_rotate %100 by %c223_i32_120 dim 1 : vector<8x256xf32>, i32 -> vector<8x256xf32>
    %cst_121 = arith.constant dense<0.000000e+00> : vector<8x256xf32>
    %139 = tpu.matmul %137, %138, %cst_121 {dimension_numbers = #tpu.dot_dimension_numbers<[1], [0], [0], [1], [0, 0, 1, 1], [], []>} : vector<8x8xf32>, vector<8x256xf32>, vector<8x256xf32> -> vector<8x256xf32>
    %140 = arith.addf %135, %139 : vector<8x256xf32>
    %c8_122 = arith.constant 8 : index
    %c0_123 = arith.constant 0 : index
    %c0_124 = arith.constant 0 : index
    %141 = vector.load %arg7[%c8_122, %c0_123, %c0_124] : memref<9x8x8xf32, #tpu.memory_space<vmem>>, vector<1x8x8xf32>
    %142 = vector.shape_cast %141 : vector<1x8x8xf32> to vector<8x8xf32>
    %c222_i32_125 = arith.constant 222 : i32
    %143 = tpu.dynamic_rotate %100 by %c222_i32_125 dim 1 : vector<8x256xf32>, i32 -> vector<8x256xf32>
    %cst_126 = arith.constant dense<0.000000e+00> : vector<8x256xf32>
    %144 = tpu.matmul %142, %143, %cst_126 {dimension_numbers = #tpu.dot_dimension_numbers<[1], [0], [0], [1], [0, 0, 1, 1], [], []>} : vector<8x8xf32>, vector<8x256xf32>, vector<8x256xf32> -> vector<8x256xf32>
    %145 = arith.addf %140, %144 : vector<8x256xf32>
    %c0_127 = arith.constant 0 : index
    %c0_128 = arith.constant 0 : index
    %146 = vector.load %arg8[%c0_127, %c0_128] : memref<8x1xf32, #tpu.memory_space<vmem>>, vector<8x1xf32>
    %147 = vector.broadcast %146 : vector<8x1xf32> to vector<8x256xf32>
    %148 = arith.mulf %145, %147 : vector<8x256xf32>
    %c0_129 = arith.constant 0 : index
    %c0_130 = arith.constant 0 : index
    %149 = vector.load %arg9[%c0_129, %c0_130] : memref<8x1xf32, #tpu.memory_space<vmem>>, vector<8x1xf32>
    %150 = vector.broadcast %149 : vector<8x1xf32> to vector<8x256xf32>
    %151 = arith.addf %148, %150 : vector<8x256xf32>
    %cst_131 = arith.constant 0.000000e+00 : f32
    %152 = vector.broadcast %cst_131 : f32 to vector<8x256xf32>
    %153 = arith.maximumf %151, %152 : vector<8x256xf32>
    %c0_132 = arith.constant 0 : index
    %c0_133 = arith.constant 0 : index
    %c0_134 = arith.constant 0 : index
    %154 = vector.load %arg10[%c0_132, %c0_133, %c0_134] : memref<1x8x256xf32, #tpu.memory_space<vmem>>, vector<1x8x256xf32>
    %155 = vector.shape_cast %154 : vector<1x8x256xf32> to vector<8x256xf32>
    %156 = vector.shape_cast %153 : vector<8x256xf32> to vector<1x8x256xf32>
    tpu.vector_store %arg10[%c0_132, %c0_133, %c0_134], %156 {strides = array<i32>} : memref<1x8x256xf32, #tpu.memory_space<vmem>>, vector<1x8x256xf32>,
    return
  }
  func.func @transform_0(%arg0: i32) -> (i32, i32, i32) {
    %c0_i32 = arith.constant 0 : i32
    %c0_i32_0 = arith.constant 0 : i32
    %c0_i32_1 = arith.constant 0 : i32
    return %arg0, %c0_i32, %c0_i32_0 : i32, i32, i32
  }
  func.func @transform_1(%arg0: i32) -> (i32, i32, i32) {
    %c0_i32 = arith.constant 0 : i32
    %c0_i32_0 = arith.constant 0 : i32
    %c0_i32_1 = arith.constant 0 : i32
    return %arg0, %c0_i32, %c0_i32_0 : i32, i32, i32
  }
  func.func @transform_2(%arg0: i32) -> (i32, i32, i32) {
    %c0_i32 = arith.constant 0 : i32
    %c0_i32_0 = arith.constant 0 : i32
    %c0_i32_1 = arith.constant 0 : i32
    %c0_i32_2 = arith.constant 0 : i32
    return %c0_i32, %c0_i32_0, %c0_i32_1 : i32, i32, i32
  }
  func.func @transform_3(%arg0: i32) -> (i32, i32, i32) {
    %c0_i32 = arith.constant 0 : i32
    %c0_i32_0 = arith.constant 0 : i32
    %c0_i32_1 = arith.constant 0 : i32
    %c0_i32_2 = arith.constant 0 : i32
    return %c0_i32, %c0_i32_0, %c0_i32_1 : i32, i32, i32
  }
  func.func @transform_4(%arg0: i32) -> (i32, i32) {
    %c0_i32 = arith.constant 0 : i32
    %c0_i32_0 = arith.constant 0 : i32
    %c0_i32_1 = arith.constant 0 : i32
    return %c0_i32, %c0_i32_0 : i32, i32
  }
  func.func @transform_5(%arg0: i32) -> (i32, i32) {
    %c0_i32 = arith.constant 0 : i32
    %c0_i32_0 = arith.constant 0 : i32
    %c0_i32_1 = arith.constant 0 : i32
    return %c0_i32, %c0_i32_0 : i32, i32
  }
  func.func @transform_6(%arg0: i32) -> (i32, i32, i32) {
    %c0_i32 = arith.constant 0 : i32
    %c0_i32_0 = arith.constant 0 : i32
    %c0_i32_1 = arith.constant 0 : i32
    %c0_i32_2 = arith.constant 0 : i32
    return %c0_i32, %c0_i32_0, %c0_i32_1 : i32, i32, i32
  }
  func.func @transform_7(%arg0: i32) -> (i32, i32) {
    %c0_i32 = arith.constant 0 : i32
    %c0_i32_0 = arith.constant 0 : i32
    %c0_i32_1 = arith.constant 0 : i32
    return %c0_i32, %c0_i32_0 : i32, i32
  }
  func.func @transform_8(%arg0: i32) -> (i32, i32) {
    %c0_i32 = arith.constant 0 : i32
    %c0_i32_0 = arith.constant 0 : i32
    %c0_i32_1 = arith.constant 0 : i32
    return %c0_i32, %c0_i32_0 : i32, i32
  }
  func.func @transform_9(%arg0: i32) -> (i32, i32, i32) {
    %c0_i32 = arith.constant 0 : i32
    %c0_i32_0 = arith.constant 0 : i32
    %c0_i32_1 = arith.constant 0 : i32
    return %arg0, %c0_i32, %c0_i32_0 : i32, i32, i32
  }
}

</mosaic_0001>

<bundles_post_ra>
// kernel: upsample_forward.2
= control target key start
LH: loop header
LB: loop body
LE: loop exit
PB: predicated region body
PF: predicated region fallthrough
CT: control target
= control target key end

     0   :  { %v130_v3 = vmov 0.0   ;;  %vm28_vm0 = vcmask 523264   ;;  %s200_s1 = inlined_call_operand.vmem [shape: f32[64,256], index: 1, kind: input, shape index: {}]   ;;  %s201_s0 = inlined_call_operand.vmem [shape: f32[4,64], index: 0, kind: input, shape index: {}]   ;;  %s202_s2 = inlined_call_operand.vmem [shape: f32[4,256], index: 2, kind: output, shape index: {}]  }
   0x1   :  { %v13_v0 = vld [vmem:[%s200_s1 + $0x8] sm:$0xff]  ;;  %v15_v1 = vld [vmem:[%s200_s1 + $0x18] sm:$0xff]  ;;  %v12_v2 = vld [vmem:[%s200_s1] sm:$0xff]  ;;  %96 = vmatprep.mubr.f32.mxu0 %v130_v3 }
   0x2   :  { %v113_v4 = vpack.c.bf16 %v15_v1, %v13_v0  ;;  %v14_v5 = vld [vmem:[%s200_s1 + $0x10] sm:$0xff]  ;;  %v17_v6 = vld [vmem:[%s200_s1 + $0x28] sm:$0xff]  ;;  %v19_v7 = vld [vmem:[%s200_s1 + $0x38] sm:$0xff] }
   0x3   :  { %v115_v8 = vpack.c.bf16 %v14_v5, %v12_v2  ;;  %v117_v9 = vpack.c.bf16 %v19_v7, %v17_v6  ;;  %v16_v10 = vld [vmem:[%s200_s1 + $0x20] sm:$0xff]  ;;  %v18_v11 = vld [vmem:[%s200_s1 + $0x30] sm:$0xff]  ;;  %v21_v12 = vld [vmem:[%s200_s1 + $0x48] sm:$0xff] }
   0x4   :  { %114 = vmatprep.subr.bf16.mxu0 %v113_v4  ;;  %v23_v13 = vld [vmem:[%s200_s1 + $0x58] sm:$0xff]  ;;  %v119_v14 = vpack.c.bf16 %v18_v11, %v16_v10  ;;  %v20_v16 = vld [vmem:[%s200_s1 + $0x40] sm:$0xff]  ;;  %v22_v17 = vld [vmem:[%s200_s1 + $0x50] sm:$0xff] }
   0x5   :  { %116 = vmatpush1.bf16.msra.mxu0 %v115_v8  ;;  %v121_v15 = vpack.c.bf16 %v23_v13, %v21_v12  ;;  %v25_v18 = vld [vmem:[%s200_s1 + $0x68] sm:$0xff]  ;;  %v27_v19 = vld [vmem:[%s200_s1 + $0x78] sm:$0xff]  ;;  %v123_v20 = vpack.c.bf16 %v22_v17, %v20_v16  ;;  %v24_v22 = vld [vmem:[%s200_s1 + $0x60] sm:$0xff] }
   0x6   :  { %118 = vmatprep.subr.bf16.mxu0 %v117_v9  ;;  %v125_v21 = vpack.c.bf16 %v27_v19, %v25_v18  ;;  %v26_v23 = vld [vmem:[%s200_s1 + $0x70] sm:$0xff]  ;;  %v11_v25 = vld [vmem:[%s201_s0] sm:$0xf] }
   0x7   :  { %v127_v24 = vpack.c.bf16 %v26_v23, %v24_v22 }
   0x9   :  { %120 = vmatpush1.bf16.msra.mxu0 %v119_v14 }
   0xa   :  { %122 = vmatprep.subr.bf16.mxu0 %v121_v15 }
   0xd   :  { %124 = vmatpush1.bf16.msra.mxu0 %v123_v20 }
   0xe   :  { %126 = vmatprep.subr.bf16.mxu0 %v125_v21 }
  0x11   :  { %128 = vmatpush1.bf16.msra.mxu0 %v127_v24 }
  0x14   :  { %112 = vmatmul.mubr.msk.f32.vlgmr.msra.gmra.mrb[0].mxu0 %vm28_vm0, %v11_v25 }
  0xe7   :  { %v98_v26 = vpop.f32.mrb[0].mxu0 }
  0xe8   :  { %v100_v27 = vpop.f32.mrb[1].mxu0 }
  0xe9   :  { %v105_v28 = vcombine.low %v98_v26, %v100_v27 }
  0xeb   :  { %107 = vst [vmem:[%s202_s2] sm:$0xff] %v105_v28 }

// kernel: upsample_forward.3
= control target key start
LH: loop header
LB: loop body
LE: loop exit
PB: predicated region body
PF: predicated region fallthrough
CT: control target
= control target key end

     0   :  { %s3081_s30 = smov 0   ;;  %s3446_s0 = inlined_call_operand.vmem [shape: f32[2,2,256], index: 0, kind: input, shape index: {}]   ;;  %s3447_s1 = inlined_call_operand.vmem [shape: f32[2,2,256], index: 1, kind: input, shape index: {}]   ;;  %s3448_s2 = inlined_call_operand.vmem [shape: f32[9,8,2], index: 2, kind: input, shape index: {}]   ;;  %s3449_s3 = inlined_call_operand.vmem [shape: f32[9,8,2], index: 3, kind: input, shape index: {}]   ;;  %s3450_s4 = inlined_call_operand.vmem [shape: f32[8,1], index: 4, kind: input, shape index: {}]   ;;  %s3451_s5 = inlined_call_operand.vmem [shape: f32[8,1], index: 5, kind: input, shape index: {}]   ;;  %s3452_s6 = inlined_call_operand.vmem [shape: f32[9,8,8], index: 6, kind: input, shape index: {}]   ;;  %s3453_s7 = inlined_call_operand.vmem [shape: f32[8,1], index: 7, kind: input, shape index: {}]   ;;  %s3454_s8 = inlined_call_operand.vmem [shape: f32[8,1], index: 8, kind: input, shape index: {}]   ;;  %s3455_s9 = inlined_call_operand.vmem [shape: f32[2,8,256], index: 9, kind: output, shape index: {}]  }
   0x1 LB: > { %s2838_s10 = sadd.s32 4294967295, %s3019_s30   ;;  %p2842_p0 = scmp.ge.s32.totalorder %s3019_s30, 1  ;;  %s3019_s30 = sphi %s3081_s30, %s19_s30  }
   0x2   : > { %p297_p1 = scmp.lt.s32.totalorder %s3019_s30, 3 }
   0x4   : > { %p298_p2 = pnand %p2842_p0, %p297_p1 }
   0x5   : > { %p338_p3 = scmp.lt.s32.totalorder (!%p298_p2), %s2838_s10, 1  ;;  %v3021_v0 = vmov (!%p298_p2), 0.0   ;;  %s3022_s18 = smov (!%p298_p2), 126   ;;  %vm370_vm0 = vcmask (!%p298_p2), 1041408   ;;  %vm366_vm1 = vcmask (!%p298_p2), 15360   ;;  %v356_v5 = vld [vmem:[%s3448_s2] sm:$0xff] (!%p298_p2)  ;;  %v541_v10 = vlaneseq (!%p298_p2) }
   0x6   : > { %301 = sbr.rel (%p298_p2) target bundleno = 866 (0x362), region = 56  ;;  %802 = vmatprep.mubr.f32.mxu0 (!%p298_p2), %v3021_v0  ;;  %439 = vmatprep.mubr.f32.mxu1 (!%p298_p2), %v3021_v0  ;;  %s3023_s19 = smov (!%p298_p2), 112   ;;  %v355_v6 = vld [vmem:[%s3449_s3] sm:$0xff] (!%p298_p2)  ;;  %v3030_v9 = vmov (!%p298_p2), 0   ;;  %v2865_v18 = vld [vmem:[%s3449_s3 + $0x10] sm:$0xff] (!%p298_p2)  ;;  %v2873_v32 = vld [vmem:[%s3449_s3 + $0x18] sm:$0xff] (!%p298_p2) }
   0x7   : > { %s3024_s20 = smov (!%p298_p2), 111   ;;  %s3025_s21 = smov (!%p298_p2), 110   ;;  %v1987_v7 = vld [vmem:[%s3450_s4] sm:$0xff] (!%p298_p2)  ;;  %3011 = vset.pattern.permute.xlu0 (!%p298_p2), %v3030_v9  ;;  %3012 = vset.pattern.permute.xlu1 (!%p298_p2), %v3030_v9  ;;  %v3152_v11 = vand.u32 (!%p298_p2), 127, %v541_v10  ;;  %v2869_v25 = vld [vmem:[%s3448_s2 + $0x10] sm:$0xff] (!%p298_p2)  ;;  %v2877_v39 = vld [vmem:[%s3448_s2 + $0x18] sm:$0xff] (!%p298_p2) }
   0x8   : > { %s3026_s22 = smov (!%p298_p2), 96   ;;  %s3027_s23 = smov (!%p298_p2), 95   ;;  %v1995_v8 = vld [vmem:[%s3451_s5] sm:$0xff] (!%p298_p2)  ;;  %v2857_v61 = vld [vmem:[%s3449_s3 + $0x8] sm:$0xff] (!%p298_p2)  ;;  %vm2014_vm10 = vcmask (!%p298_p2), 64512  }
   0x9   : > { %s3028_s26 = smov (!%p298_p2), 127   ;;  %s3029_s29 = smov (!%p298_p2), 94   ;;  %vm726_vm2 = vcmp.lt.s32.totalorder (!%p298_p2), %v3152_v11, 126  ;;  %vm907_vm3 = vcmp.lt.s32.totalorder (!%p298_p2), %v3152_v11, 112  ;;  %vm1088_vm4 = vcmp.lt.s32.totalorder (!%p298_p2), %v3152_v11, 111  ;;  %vm1269_vm5 = vcmp.lt.s32.totalorder (!%p298_p2), %v3152_v11, 110 }
   0xa   : > { %v2881_v46 = vld [vmem:[%s3449_s3 + $0x20] sm:$0xff] (!%p298_p2)  ;;  %vm543_vm6 = vcmp.lt.s32.totalorder (!%p298_p2), %v3152_v11, 127  ;;  %vm1450_vm7 = vcmp.lt.s32.totalorder (!%p298_p2), %v3152_v11, 96  ;;  %v2889_v63 = vld [vmem:[%s3449_s3 + $0x28] sm:$0xff] (!%p298_p2)  ;;  %vm1631_vm8 = vcmp.lt.s32.totalorder (!%p298_p2), %v3152_v11, 95  ;;  %vm1812_vm9 = vcmp.lt.s32.totalorder (!%p298_p2), %v3152_v11, 94 }
   0xb   : > { %v2885_v53 = vld [vmem:[%s3448_s2 + $0x20] sm:$0xff] (!%p298_p2)  ;;  %v2893_v9 = vld [vmem:[%s3448_s2 + $0x28] sm:$0xff] (!%p298_p2) }
   0xd   : > { %s3457_s10 = smov (!%p338_p3, %s2838_s10), 1 }
   0xe   : > { %s2940_s11 = sshll.u32 %s3457_s10, 2 }
   0xf   : > { %s347_s14 = scalar_lea.vmem %s3447_s1, %s2940_s11  ;;  %s342_s17 = scalar_lea.vmem %s3446_s0, %s2940_s11 }
  0x10   : > { %v2853_v1 = vld.sshfl [vmem:[%s347_s14] sm:$0x33 pattern:$0x76325410] }
  0x11   : > { %722 = vrot.lane.b32.xlu0 %v2853_v1, %s3022_s18  ;;  %v2849_v2 = vld.sshfl [vmem:[%s342_s17] sm:$0x33 pattern:$0x76325410]  ;;  %v454_v3 = vcombine.high %v2853_v1, %v2853_v1 }
  0x12   : > { %813 = vrot.lane.b32.xlu1 %v2849_v2, %s3022_s18  ;;  %v365_v4 = vcombine.high %v2849_v2, %v2849_v2 }
  0x14   : > { %2850 = vmatprep.subr.msk.mxu1 %vm370_vm0, %v365_v4 }
  0x15   : > { %724 = vrot.lane.b32.xlu0 %v454_v3, %s3022_s18  ;;  %2851 = vmatpush1.msk.msra.mxu1 %vm370_vm0, %v2849_v2 }
  0x16   : > { %815 = vrot.lane.b32.xlu1 %v365_v4, %s3022_s18  ;;  %2854 = vmatprep.subr.msk.mxu1 %vm370_vm0, %v454_v3 }
  0x17   : > { %2852 = vmatmul.mubr.msk.f32.vlgmr.msra.gmra.mrb[0].mxu1 %vm366_vm1, %v356_v5 }
  0x18   : > { %2855 = vmatpush1.msk.msra.mxu1 %vm370_vm0, %v2853_v1  ;;  %526 = vmatprep.mubr.f32.mxu1 %v3021_v0 }
  0x19   : > { %903 = vrot.lane.b32.xlu0 %v2853_v1, %s3023_s19 }
  0x1a   : > { %905 = vrot.lane.b32.xlu1 %v454_v3, %s3023_s19 }
  0x1d   : > { %994 = vrot.lane.b32.xlu0 %v2849_v2, %s3023_s19 }
  0x1e   : > { %996 = vrot.lane.b32.xlu1 %v365_v4, %s3023_s19 }
  0x1f   : > { %2856 = vmatmul.mubr.msk.f32.vlgmr.msra.gmra.mrb[0].mxu1 %vm366_vm1, %v355_v6 }
  0x20   : > { %619 = vmatprep.mubr.f32.mxu1 %v3021_v0 }
  0x21   : > { %1084 = vrot.lane.b32.xlu0 %v2853_v1, %s3024_s20 }
  0x22   : > { %1086 = vrot.lane.b32.xlu1 %v454_v3, %s3024_s20 }
  0x25   : > { %1175 = vrot.lane.b32.xlu0 %v2849_v2, %s3024_s20 }
  0x26   : > { %1177 = vrot.lane.b32.xlu1 %v365_v4, %s3024_s20 }
  0x29   : > { %1265 = vrot.lane.b32.xlu0 %v2853_v1, %s3025_s21 }
  0x2a   : > { %1267 = vrot.lane.b32.xlu1 %v454_v3, %s3025_s21 }
  0x2d   : > { %1356 = vrot.lane.b32.xlu0 %v2849_v2, %s3025_s21 }
  0x2e   : > { %1358 = vrot.lane.b32.xlu1 %v365_v4, %s3025_s21 }
  0x31   : > { %1446 = vrot.lane.b32.xlu0 %v2853_v1, %s3026_s22 }
  0x32   : > { %1448 = vrot.lane.b32.xlu1 %v454_v3, %s3026_s22 }
  0x35   : > { %1537 = vrot.lane.b32.xlu0 %v2849_v2, %s3026_s22 }
  0x36   : > { %1539 = vrot.lane.b32.xlu1 %v365_v4, %s3026_s22 }
  0x39   : > { %1627 = vrot.lane.b32.xlu0 %v2853_v1, %s3027_s23 }
  0x3a   : > { %1629 = vrot.lane.b32.xlu1 %v454_v3, %s3027_s23 }
  0x3d   : > { %1718 = vrot.lane.b32.xlu0 %v2849_v2, %s3027_s23 }
  0x3e   : > { %1720 = vrot.lane.b32.xlu1 %v365_v4, %s3027_s23 }
  0x41   : > { %537 = vrot.lane.b32.xlu0 %v2853_v1, %s3028_s26 }
  0x42   : > { %539 = vrot.lane.b32.xlu1 %v454_v3, %s3028_s26 }
  0x45   : > { %1808 = vrot.lane.b32.xlu0 %v2853_v1, %s3029_s29 }
  0x46   : > { %1810 = vrot.lane.b32.xlu1 %v454_v3, %s3029_s29 }
  0x49   : > { %632 = vrot.lane.b32.xlu0 %v2849_v2, %s3028_s26 }
  0x4a   : > { %634 = vrot.lane.b32.xlu1 %v365_v4, %s3028_s26 }
  0x4d   : > { %1899 = vrot.lane.b32.xlu0 %v2849_v2, %s3029_s29 }
  0x4e   : > { %1901 = vrot.lane.b32.xlu1 %v365_v4, %s3029_s29 }
  0x51   : > { %1990 = vperm.xlu0 %3011, %v1987_v7  }
  0x52   : > { %1998 = vperm.xlu1 %3012, %v1995_v8   ;;  %v2861_v8 = vld [vmem:[%s3448_s2 + $0x8] sm:$0xff] }
  0x83   : > { %v723_v12 = vpop.permute.xlu0 %722 }
  0x84   : > { %v814_v13 = vpop.permute.xlu1 %813 }
  0x87   : > { %v725_v14 = vpop.permute.xlu0 %724 }
  0x88   : > { %v816_v15 = vpop.permute.xlu1 %815  ;;  %v728_v16 = vsel %vm726_vm2, %v725_v14, %v723_v12  ;;  %v727_v17 = vsel %vm726_vm2, %v723_v12, %v725_v14 }
  0x89   : > { %v817_v19 = vsel %vm726_vm2, %v814_v13, %v816_v15  ;;  %v818_v20 = vsel %vm726_vm2, %v816_v15, %v814_v13  ;;  %2866 = vmatprep.subr.msk.mxu0 %vm370_vm0, %v728_v16  ;;  %v2897_v13 = vld [vmem:[%s3449_s3 + $0x30] sm:$0xff] }
  0x8a   : > { %2867 = vmatpush1.msk.msra.mxu0 %vm370_vm0, %v727_v17  ;;  %v2901_v16 = vld [vmem:[%s3448_s2 + $0x30] sm:$0xff] }
  0x8b   : > { %2868 = vmatmul.mubr.msk.f32.vlgmr.msra.gmra.mrb[0].mxu0 %vm366_vm1, %v2865_v18  ;;  %2870 = vmatprep.subr.msk.mxu0 %vm370_vm0, %v818_v20  ;;  %v904_v21 = vpop.permute.xlu0 %903 }
  0x8c   : > { %2871 = vmatpush1.msk.msra.mxu0 %vm370_vm0, %v817_v19  ;;  %892 = vmatprep.mubr.f32.mxu0 %v3021_v0  ;;  %v906_v22 = vpop.permute.xlu1 %905  ;;  %v2905_v19 = vld [vmem:[%s3449_s3 + $0x38] sm:$0xff] }
  0x8d   : > { %v909_v23 = vsel %vm907_vm3, %v906_v22, %v904_v21  ;;  %v908_v27 = vsel %vm907_vm3, %v904_v21, %v906_v22 }
  0x8e   : > { %2874 = vmatprep.subr.msk.mxu0 %vm370_vm0, %v909_v23 }
  0x8f   : > { %v995_v24 = vpop.permute.xlu0 %994 }
  0x90   : > { %v997_v26 = vpop.permute.xlu1 %996 }
  0x91   : > { %v999_v28 = vsel %vm907_vm3, %v997_v26, %v995_v24  ;;  %v998_v34 = vsel %vm907_vm3, %v995_v24, %v997_v26  ;;  %v2909_v24 = vld [vmem:[%s3448_s2 + $0x38] sm:$0xff] }
  0x93   : > { %2872 = vmatmul.mubr.msk.f32.vlgmr.msra.gmra.mrb[0].mxu0 %vm366_vm1, %v2869_v25  ;;  %v1085_v29 = vpop.permute.xlu0 %1084 }
  0x94   : > { %2875 = vmatpush1.msk.msra.mxu0 %vm370_vm0, %v908_v27  ;;  %983 = vmatprep.mubr.f32.mxu0 %v3021_v0  ;;  %v1087_v30 = vpop.permute.xlu1 %1086  ;;  %v2913_v27 = vld [vmem:[%s3449_s3 + $0x40] sm:$0xff] }
  0x95   : > { %2878 = vmatprep.subr.msk.mxu0 %vm370_vm0, %v999_v28  ;;  %v1090_v35 = vsel %vm1088_vm4, %v1087_v30, %v1085_v29  ;;  %v1089_v41 = vsel %vm1088_vm4, %v1085_v29, %v1087_v30  ;;  %v2917_v29 = vld [vmem:[%s3448_s2 + $0x40] sm:$0xff] }
  0x97   : > { %v1176_v31 = vpop.permute.xlu0 %1175 }
  0x98   : > { %v1178_v33 = vpop.permute.xlu1 %1177 }
  0x99   : > { %v1180_v42 = vsel %vm1088_vm4, %v1178_v33, %v1176_v31  ;;  %v1179_v48 = vsel %vm1088_vm4, %v1176_v31, %v1178_v33 }
  0x9b   : > { %2876 = vmatmul.mubr.msk.f32.vlgmr.msra.gmra.mrb[0].mxu0 %vm366_vm1, %v2873_v32  ;;  %v1266_v36 = vpop.permute.xlu0 %1265 }
  0x9c   : > { %2879 = vmatpush1.msk.msra.mxu0 %vm370_vm0, %v998_v34  ;;  %1073 = vmatprep.mubr.f32.mxu0 %v3021_v0  ;;  %v1268_v37 = vpop.permute.xlu1 %1267 }
  0x9d   : > { %2882 = vmatprep.subr.msk.mxu0 %vm370_vm0, %v1090_v35  ;;  %v1271_v49 = vsel %vm1269_vm5, %v1268_v37, %v1266_v36  ;;  %v1270_v55 = vsel %vm1269_vm5, %v1266_v36, %v1268_v37 }
  0x9f   : > { %v1357_v38 = vpop.permute.xlu0 %1356 }
  0xa0   : > { %v1359_v40 = vpop.permute.xlu1 %1358 }
  0xa1   : > { %v1361_v56 = vsel %vm1269_vm5, %v1359_v40, %v1357_v38  ;;  %v1360_v2 = vsel %vm1269_vm5, %v1357_v38, %v1359_v40 }
  0xa3   : > { %2880 = vmatmul.mubr.msk.f32.vlgmr.msra.gmra.mrb[0].mxu0 %vm366_vm1, %v2877_v39  ;;  %v1447_v43 = vpop.permute.xlu0 %1446 }
  0xa4   : > { %2883 = vmatpush1.msk.msra.mxu0 %vm370_vm0, %v1089_v41  ;;  %1164 = vmatprep.mubr.f32.mxu0 %v3021_v0  ;;  %v1449_v44 = vpop.permute.xlu1 %1448 }
  0xa5   : > { %2886 = vmatprep.subr.msk.mxu0 %vm370_vm0, %v1180_v42  ;;  %v1452_v3 = vsel %vm1450_vm7, %v1449_v44, %v1447_v43  ;;  %v1451_v10 = vsel %vm1450_vm7, %v1447_v43, %v1449_v44  ;;  %v2751_v44 = vld [vmem:[%s3453_s7] sm:$0xff] }
  0xa7   : > { %v1538_v45 = vpop.permute.xlu0 %1537 }
  0xa8   : > { %v1540_v47 = vpop.permute.xlu1 %1539 }
  0xa9   : > { %v1542_v12 = vsel %vm1450_vm7, %v1540_v47, %v1538_v45  ;;  %v1541_v14 = vsel %vm1450_vm7, %v1538_v45, %v1540_v47  ;;  %v2759_v45 = vld [vmem:[%s3454_s8] sm:$0xff] }
  0xab   : > { %2884 = vmatmul.mubr.msk.f32.vlgmr.msra.gmra.mrb[0].mxu0 %vm366_vm1, %v2881_v46  ;;  %v1628_v50 = vpop.permute.xlu0 %1627 }
  0xac   : > { %2887 = vmatpush1.msk.msra.mxu0 %vm370_vm0, %v1179_v48  ;;  %1254 = vmatprep.mubr.f32.mxu0 %v3021_v0  ;;  %v1630_v51 = vpop.permute.xlu1 %1629 }
  0xad   : > { %2890 = vmatprep.subr.msk.mxu0 %vm370_vm0, %v1271_v49  ;;  %v1633_v15 = vsel %vm1631_vm8, %v1630_v51, %v1628_v50  ;;  %v1632_v17 = vsel %vm1631_vm8, %v1628_v50, %v1630_v51  ;;  %v2921_v50 = vld [vmem:[%s3452_s6 + $0x8] sm:$0xff] }
  0xaf   : > { %v3222_v52 = vpop.permute.xlu0 %1718 }
  0xb0   : > { %v1721_v54 = vpop.permute.xlu1 %1720 }
  0xb1   : > { %v1723_v18 = vsel %vm1631_vm8, %v1721_v54, %v3222_v52  ;;  %v1722_v20 = vsel %vm1631_vm8, %v3222_v52, %v1721_v54  ;;  %v2005_v54 = vld [vmem:[%s3452_s6] sm:$0xff] }
  0xb3   : > { %2888 = vmatmul.mubr.msk.f32.vlgmr.msra.gmra.mrb[0].mxu0 %vm366_vm1, %v2885_v53  ;;  %v538_v57 = vpop.permute.xlu0 %537 }
  0xb4   : > { %2891 = vmatpush1.msk.msra.mxu0 %vm370_vm0, %v1270_v55  ;;  %1345 = vmatprep.mubr.f32.mxu0 %v3021_v0  ;;  %v540_v58 = vpop.permute.xlu1 %539 }
  0xb5   : > { %2894 = vmatprep.subr.msk.mxu0 %vm370_vm0, %v1361_v56  ;;  %v544_v59 = vsel %vm543_vm6, %v538_v57, %v540_v58  ;;  %v545_v60 = vsel %vm543_vm6, %v540_v58, %v538_v57 }
  0xb6   : > { %2858 = vmatprep.subr.msk.mxu1 %vm370_vm0, %v545_v60 }
  0xb7   : > { %2859 = vmatpush1.msk.msra.mxu1 %vm370_vm0, %v544_v59  ;;  %v1809_v62 = vpop.permute.xlu0 %1808  ;;  %v2924_v59 = vld [vmem:[%s3452_s6 + $0x10] sm:$0xff] }
  0xb8   : > { %v1811_v1 = vpop.permute.xlu1 %1810  ;;  %2860 = vmatmul.mubr.msk.f32.vlgmr.msra.gmra.mrb[0].mxu1 %vm366_vm1, %v2857_v61 }
  0xb9   : > { %711 = vmatprep.mubr.f32.mxu1 %v3021_v0  ;;  %v1814_v21 = vsel %vm1812_vm9, %v1811_v1, %v1809_v62  ;;  %v1813_v25 = vsel %vm1812_vm9, %v1809_v62, %v1811_v1  ;;  %v2926_v1 = vld [vmem:[%s3452_s6 + $0x18] sm:$0xff] }
  0xbb   : > { %2892 = vmatmul.mubr.msk.f32.vlgmr.msra.gmra.mrb[0].mxu0 %vm366_vm1, %v2889_v63  ;;  %v633_v4 = vpop.permute.xlu0 %632 }
  0xbc   : > { %2895 = vmatpush1.msk.msra.mxu0 %vm370_vm0, %v1360_v2  ;;  %1435 = vmatprep.mubr.f32.mxu0 %v3021_v0  ;;  %v635_v5 = vpop.permute.xlu1 %634 }
  0xbd   : > { %2898 = vmatprep.subr.msk.mxu0 %vm370_vm0, %v1452_v3  ;;  %v636_v6 = vsel %vm543_vm6, %v633_v4, %v635_v5  ;;  %v637_v7 = vsel %vm543_vm6, %v635_v5, %v633_v4 }
  0xbe   : > { %2862 = vmatprep.subr.msk.mxu1 %vm370_vm0, %v637_v7 }
  0xbf   : > { %2863 = vmatpush1.msk.msra.mxu1 %vm370_vm0, %v636_v6  ;;  %v1900_v22 = vpop.permute.xlu0 %1899  ;;  %v2928_v6 = vld [vmem:[%s3452_s6 + $0x20] sm:$0xff] }
  0xc0   : > { %2864 = vmatmul.mubr.msk.f32.vlgmr.msra.gmra.mrb[0].mxu1 %vm366_vm1, %v2861_v8  ;;  %v1902_v23 = vpop.permute.xlu1 %1901 }
  0xc1   : > { %2082 = vmatprep.mubr.f32.mxu1 %v3021_v0  ;;  %v1904_v26 = vsel %vm1812_vm9, %v1902_v23, %v1900_v22  ;;  %v1903_v28 = vsel %vm1812_vm9, %v1900_v22, %v1902_v23  ;;  %v2934_v22 = vld [vmem:[%s3452_s6 + $0x38] sm:$0xff] }
  0xc3   : > { %2896 = vmatmul.mubr.msk.f32.vlgmr.msra.gmra.mrb[0].mxu0 %vm366_vm1, %v2893_v9 }
  0xc4   : > { %2899 = vmatpush1.msk.msra.mxu0 %vm370_vm0, %v1451_v10  ;;  %1526 = vmatprep.mubr.f32.mxu0 %v3021_v0 }
  0xc5   : > { %2902 = vmatprep.subr.msk.mxu0 %vm370_vm0, %v1542_v12  ;;  %v2930_v12 = vld [vmem:[%s3452_s6 + $0x28] sm:$0xff] }
  0xcb   : > { %2900 = vmatmul.mubr.msk.f32.vlgmr.msra.gmra.mrb[0].mxu0 %vm366_vm1, %v2897_v13 }
  0xcc   : > { %2903 = vmatpush1.msk.msra.mxu0 %vm370_vm0, %v1541_v14  ;;  %1616 = vmatprep.mubr.f32.mxu0 %v3021_v0 }
  0xcd   : > { %2906 = vmatprep.subr.msk.mxu0 %vm370_vm0, %v1633_v15 }
  0xd0   : > { %v1991_v33 = vpop.permute.xlu0 %1990 }
  0xd1   : > { %v1999_v37 = vpop.permute.xlu1 %1998 }
  0xd3   : > { %2904 = vmatmul.mubr.msk.f32.vlgmr.msra.gmra.mrb[0].mxu0 %vm366_vm1, %v2901_v16 }
  0xd4   : > { %2907 = vmatpush1.msk.msra.mxu0 %vm370_vm0, %v1632_v17  ;;  %1707 = vmatprep.mubr.f32.mxu0 %v3021_v0  ;;  %v2932_v17 = vld [vmem:[%s3452_s6 + $0x30] sm:$0xff] }
  0xd5   : > { %2910 = vmatprep.subr.msk.mxu0 %vm370_vm0, %v1723_v18 }
  0xdb   : > { %2908 = vmatmul.mubr.msk.f32.vlgmr.msra.gmra.mrb[0].mxu0 %vm366_vm1, %v2905_v19 }
  0xdc   : > { %2911 = vmatpush1.msk.msra.mxu0 %vm370_vm0, %v1722_v20  ;;  %1797 = vmatprep.mubr.f32.mxu0 %v3021_v0 }
  0xdd   : > { %2914 = vmatprep.subr.msk.mxu0 %vm370_vm0, %v1814_v21 }
  0xe3   : > { %2912 = vmatmul.mubr.msk.f32.vlgmr.msra.gmra.mrb[0].mxu0 %vm366_vm1, %v2909_v24  ;;  %v2936_v24 = vld [vmem:[%s3452_s6 + $0x40] sm:$0xff] }
  0xe4   : > { %2915 = vmatpush1.msk.msra.mxu0 %vm370_vm0, %v1813_v25  ;;  %1888 = vmatprep.mubr.f32.mxu0 %v3021_v0 }
  0xe5   : > { %2918 = vmatprep.subr.msk.mxu0 %vm370_vm0, %v1904_v26 }
  0xeb   : > { %2916 = vmatmul.mubr.msk.f32.vlgmr.msra.gmra.mrb[0].mxu0 %vm366_vm1, %v2913_v27 }
  0xec   : > { %2919 = vmatpush1.msk.msra.mxu0 %vm370_vm0, %v1903_v28  ;;  %1978 = vmatprep.mubr.f32.mxu0 %v3021_v0 }
  0xf3   : > { %2920 = vmatmul.mubr.msk.f32.vlgmr.msra.gmra.mrb[0].mxu0 %vm366_vm1, %v2917_v29 }
 0x193   : > { %v713_v30 = vpop.f32.mrb[0].mxu1 }
 0x194   : > { %v715_v31 = vpop.f32.mrb[1].mxu1 }
 0x1c6   : > { %v1980_v32 = vpop.f32.mrb[0].mxu0 }
 0x1c7   : > { %v2943_v34 = vadd.f32 %v1980_v32, %v713_v30  ;;  %v1982_v35 = vpop.f32.mrb[1].mxu0 }
 0x1c8   : > { %v2944_v36 = vadd.f32 %v1982_v35, %v715_v31 }
 0x1c9   : > { %v1993_v38 = vmul.f32 %v2943_v34, %v1991_v33 }
 0x1ca   : > { %v1994_v39 = vmul.f32 %v2944_v36, %v1991_v33 }
 0x1cb   : > { %v2001_v40 = vadd.f32 %v1999_v37, %v1993_v38 }
 0x1cc   : > { %v2002_v41 = vadd.f32 %v1999_v37, %v1994_v39 }
 0x1cd   : > { %v2003_v42 = vmax.f32 %v2001_v40, 0.0 }
 0x1ce   : > { %v2004_v43 = vmax.f32 %v2002_v41, 0.0 }
 0x1cf   : > { %2008 = vrot.lane.b32.xlu1 %v2003_v42, %s3028_s26 }
 0x1d0   : > { %2010 = vrot.lane.b32.xlu0 %v2004_v43, %s3028_s26  ;;  %s2942_s26 = sshll.u32 %s3457_s10, 4 }
 0x1d3   : > { %2165 = vrot.lane.b32.xlu1 %v2003_v42, %s3022_s18 }
 0x1d4   : > { %2167 = vrot.lane.b32.xlu0 %v2004_v43, %s3022_s18 }
 0x1d7   : > { %2249 = vrot.lane.b32.xlu1 %v2003_v42, %s3023_s19 }
 0x1d8   : > { %2251 = vrot.lane.b32.xlu0 %v2004_v43, %s3023_s19 }
 0x1db   : > { %2333 = vrot.lane.b32.xlu1 %v2003_v42, %s3024_s20 }
 0x1dc   : > { %2335 = vrot.lane.b32.xlu0 %v2004_v43, %s3024_s20 }
 0x1df   : > { %2417 = vrot.lane.b32.xlu1 %v2003_v42, %s3025_s21 }
 0x1e0   : > { %2419 = vrot.lane.b32.xlu0 %v2004_v43, %s3025_s21 }
 0x1e3   : > { %2501 = vrot.lane.b32.xlu1 %v2003_v42, %s3026_s22 }
 0x1e4   : > { %2503 = vrot.lane.b32.xlu0 %v2004_v43, %s3026_s22 }
 0x1e7   : > { %2585 = vrot.lane.b32.xlu1 %v2003_v42, %s3027_s23 }
 0x1e8   : > { %2587 = vrot.lane.b32.xlu0 %v2004_v43, %s3027_s23  ;;  %s352_s23 = scalar_lea.vmem %s3455_s9, %s2942_s26 }
 0x1eb   : > { %2669 = vrot.lane.b32.xlu1 %v2003_v42, %s3029_s29 }
 0x1ec   : > { %2671 = vrot.lane.b32.xlu0 %v2004_v43, %s3029_s29 }
 0x1ef   : > { %2754 = vperm.xlu1 %3012, %v2751_v44  }
 0x1f0   : > { %2762 = vperm.xlu0 %3011, %v2759_v45  }
 0x241   : > { %v2009_v46 = vpop.permute.xlu1 %2008 }
 0x242   : > { %v2011_v47 = vpop.permute.xlu0 %2010 }
 0x243   : > { %v2012_v48 = vsel %vm543_vm6, %v2009_v46, %v2011_v47  ;;  %v2013_v49 = vsel %vm543_vm6, %v2011_v47, %v2009_v46 }
 0x244   : > { %2018 = vmatprep.subr.mxu1 %v2013_v49 }
 0x245   : > { %v2166_v51 = vpop.permute.xlu1 %2165  ;;  %2019 = vmatpush1.msra.mxu1 %v2012_v48 }
 0x246   : > { %2922 = vmatmul.mubr.msk.f32.vlgmr.msra.gmra.mrb[2].mxu1 %vm2014_vm10, %v2921_v50  ;;  %2092 = vmatprep.subr.mxu1 %v2004_v43  ;;  %v2168_v52 = vpop.permute.xlu0 %2167 }
 0x247   : > { %2093 = vmatpush1.msra.mxu1 %v2003_v42  ;;  %v2170_v53 = vsel %vm726_vm2, %v2168_v52, %v2166_v51  ;;  %2156 = vmatprep.mubr.f32.mxu1 %v3021_v0  ;;  %v2169_v57 = vsel %vm726_vm2, %v2166_v51, %v2168_v52 }
 0x248   : > { %2174 = vmatprep.subr.mxu1 %v2170_v53 }
 0x249   : > { %v2250_v55 = vpop.permute.xlu1 %2249 }
 0x24a   : > { %v2252_v56 = vpop.permute.xlu0 %2251 }
 0x24b   : > { %v2254_v58 = vsel %vm907_vm3, %v2252_v56, %v2250_v55  ;;  %v2253_v62 = vsel %vm907_vm3, %v2250_v55, %v2252_v56 }
 0x24d   : > { %v2334_v60 = vpop.permute.xlu1 %2333 }
 0x24e   : > { %2923 = vmatmul.mubr.msk.f32.vlgmr.msra.gmra.mrb[2].mxu1 %vm2014_vm10, %v2005_v54  ;;  %v2336_v61 = vpop.permute.xlu0 %2335 }
 0x24f   : > { %2175 = vmatpush1.msra.mxu1 %v2169_v57  ;;  %2238 = vmatprep.mubr.f32.mxu1 %v3021_v0  ;;  %v2338_v63 = vsel %vm1088_vm4, %v2336_v61, %v2334_v60  ;;  %v2337_v4 = vsel %vm1088_vm4, %v2334_v60, %v2336_v61 }
 0x250   : > { %2258 = vmatprep.subr.mxu1 %v2254_v58 }
 0x251   : > { %v2418_v2 = vpop.permute.xlu1 %2417 }
 0x252   : > { %v2420_v3 = vpop.permute.xlu0 %2419 }
 0x253   : > { %v2422_v5 = vsel %vm1269_vm5, %v2420_v3, %v2418_v2  ;;  %v2421_v9 = vsel %vm1269_vm5, %v2418_v2, %v2420_v3 }
 0x255   : > { %v2502_v7 = vpop.permute.xlu1 %2501 }
 0x256   : > { %2925 = vmatmul.mubr.msk.f32.vlgmr.msra.gmra.mrb[2].mxu1 %vm2014_vm10, %v2924_v59  ;;  %v2504_v8 = vpop.permute.xlu0 %2503 }
 0x257   : > { %2259 = vmatpush1.msra.mxu1 %v2253_v62  ;;  %2322 = vmatprep.mubr.f32.mxu1 %v3021_v0  ;;  %v2506_v10 = vsel %vm1450_vm7, %v2504_v8, %v2502_v7  ;;  %v2505_v15 = vsel %vm1450_vm7, %v2502_v7, %v2504_v8 }
 0x258   : > { %2342 = vmatprep.subr.mxu1 %v2338_v63 }
 0x259   : > { %v2586_v13 = vpop.permute.xlu1 %2585 }
 0x25a   : > { %v2588_v14 = vpop.permute.xlu0 %2587 }
 0x25b   : > { %v2590_v16 = vsel %vm1631_vm8, %v2588_v14, %v2586_v13  ;;  %v2589_v20 = vsel %vm1631_vm8, %v2586_v13, %v2588_v14 }
 0x25d   : > { %v2670_v18 = vpop.permute.xlu1 %2669 }
 0x25e   : > { %2927 = vmatmul.mubr.msk.f32.vlgmr.msra.gmra.mrb[2].mxu1 %vm2014_vm10, %v2926_v1  ;;  %v2672_v19 = vpop.permute.xlu0 %2671 }
 0x25f   : > { %2343 = vmatpush1.msra.mxu1 %v2337_v4  ;;  %2406 = vmatprep.mubr.f32.mxu1 %v3021_v0  ;;  %v2674_v21 = vsel %vm1812_vm9, %v2672_v19, %v2670_v18  ;;  %v2673_v23 = vsel %vm1812_vm9, %v2670_v18, %v2672_v19 }
 0x260   : > { %2426 = vmatprep.subr.mxu1 %v2422_v5 }
 0x266   : > { %2929 = vmatmul.mubr.msk.f32.vlgmr.msra.gmra.mrb[2].mxu1 %vm2014_vm10, %v2928_v6 }
 0x267   : > { %2427 = vmatpush1.msra.mxu1 %v2421_v9  ;;  %2490 = vmatprep.mubr.f32.mxu1 %v3021_v0 }
 0x268   : > { %2510 = vmatprep.subr.mxu1 %v2506_v10 }
 0x26e   : > { %2931 = vmatmul.mubr.msk.f32.vlgmr.msra.gmra.mrb[2].mxu1 %vm2014_vm10, %v2930_v12  ;;  %v2755_v25 = vpop.permute.xlu1 %2754 }
 0x26f   : > { %2511 = vmatpush1.msra.mxu1 %v2505_v15  ;;  %2574 = vmatprep.mubr.f32.mxu1 %v3021_v0  ;;  %v2763_v29 = vpop.permute.xlu0 %2762 }
 0x270   : > { %2594 = vmatprep.subr.mxu1 %v2590_v16 }
 0x276   : > { %2933 = vmatmul.mubr.msk.f32.vlgmr.msra.gmra.mrb[2].mxu1 %vm2014_vm10, %v2932_v17 }
 0x277   : > { %2595 = vmatpush1.msra.mxu1 %v2589_v20  ;;  %2658 = vmatprep.mubr.f32.mxu1 %v3021_v0 }
 0x278   : > { %2678 = vmatprep.subr.mxu1 %v2674_v21 }
 0x27e   : > { %2935 = vmatmul.mubr.msk.f32.vlgmr.msra.gmra.mrb[2].mxu1 %vm2014_vm10, %v2934_v22 }
 0x27f   : > { %2679 = vmatpush1.msra.mxu1 %v2673_v23  ;;  %2742 = vmatprep.mubr.f32.mxu1 %v3021_v0 }
 0x286   : > { %2937 = vmatmul.mubr.msk.f32.vlgmr.msra.gmra.mrb[2].mxu1 %vm2014_vm10, %v2936_v24 }
 0x359   : > { %v2744_v26 = vpop.f32.mrb[2].mxu1 }
 0x35a   : > { %v2757_v27 = vmul.f32 %v2755_v25, %v2744_v26  ;;  %v2746_v28 = vpop.f32.mrb[3].mxu1 }
 0x35b   : > { %v2758_v30 = vmul.f32 %v2755_v25, %v2746_v28 }
 0x35c   : > { %v2765_v11 = vadd.f32 %v2763_v29, %v2757_v27 }
 0x35d   : > { %v2766_v31 = vadd.f32 %v2763_v29, %v2758_v30 }
 0x35e   : > { %v2767_v0 = vmax.f32 %v2765_v11, 0.0 }
 0x35f   : > { %v2768_v32 = vmax.f32 %v2766_v31, 0.0 }
 0x360   : > { %2769 = vst [vmem:[%s352_s23] sm:$0xff] %v2767_v0 }
 0x361   : > { %2770 = vst [vmem:[%s352_s23 + $0x8] sm:$0xff] %v2768_v32 }
 0x362 PF: > { %s19_s30 = sadd.s32 1, %s3019_s30  }
 0x363   : > { %p16_p4 = scmp.ge.s32.totalorder %s19_s30, 4  }
 0x365   :  { %18 = sbr.rel (!%p16_p4) target bundleno = 1 (0x1), region = 113 }

</bundles_post_ra>
